<compile_context>
chip_gen: v5e
topology: v5e:2x2
jax: 0.10.0
libtpu: 0.0.40
codegen_flags: <defaults>
</compile_context>

<pallas_src>
import jax
import jax.numpy as jnp
from jax import lax
from jax.experimental import pallas as pl
from jax.experimental.pallas import tpu as pltpu

_LANE = 128
_SUBLANE = 8


def _round_up(x, m):
    return ((x + m - 1) // m) * m


def _vmem_cap_bytes():
    # Generation-aware cap: 75% of physical VMEM, conservative fallback (v7x-safe).
    try:
        cap = pltpu.get_tpu_info().vmem_capacity_bytes
        return int(cap * 0.75)
    except Exception:
        return 48 << 20


def _linear_sigmoid_kernel(x_ref, w_ref, b_ref, o_ref):
    # x_ref: (TB, D)   w_ref: (C_pad, D)   b_ref: (C_pad, 1)   o_ref: (C_pad, TB)
    # Contract dim 1 of both operands -> (C_pad, TB); classes on sublanes, batch on
    # lanes.  No transpose is materialized on the host or per grid step.
    logits = lax.dot_general(
        w_ref[...], x_ref[...],
        dimension_numbers=(((1,), (1,)), ((), ())),
        preferred_element_type=jnp.float32,
    )
    logits = logits + b_ref[...]                 # (C_pad, 1) broadcasts over lanes
    # sigmoid via EUP: exp + reciprocal (exact) instead of a VPU divide.
    e = jnp.exp(-logits)
    o_ref[...] = pl.reciprocal(1.0 + e).astype(o_ref.dtype)


def prepare_params(weight, bias):
    """One-time (init-time) parameter prep: pad classes to 8 sublanes, reshape bias.

    weight: (C, D) f32 (PyTorch nn.Linear layout); bias: (C,) f32.
    Returns (w_pad (C_pad, D), b_pad (C_pad, 1)).
    """
    C, D = weight.shape
    C_pad = max(_SUBLANE, _round_up(C, _SUBLANE))
    if C_pad != C:
        weight = jnp.pad(weight, ((0, C_pad - C), (0, 0)))
        bias = jnp.pad(bias, (0, C_pad - C))
    return weight, bias.reshape(C_pad, 1)


def cancer_classification_forward(x, w_pad, b_pad, num_classes, *, block_b=2048):
    """x: (B, D) f32; w_pad/b_pad from prepare_params(). Returns (B, num_classes)."""
    B, D = x.shape
    C_pad = w_pad.shape[0]

    # Batch tiling (batch lives on the output lane axis).
    if B <= _LANE:
        TB = B            # single block == full array dims (satisfies (8,128) rule)
        grid_b = 1
    else:
        # Multiple-of-128 tiles; aim for >= 2 grid steps so v7x megacore can split
        # the batch across both TensorCores.  Ragged last block is masked by Pallas.
        TB = min(block_b, _round_up(pl.cdiv(B, 2), _LANE))
        grid_b = pl.cdiv(B, TB)

    # VMEM budget: double-buffered x tile, double-buffered out tile, and the
    # (grid-invariant but conservatively double-counted) weight + bias.
    vmem_bytes = 4 * (2 * TB * D + 2 * C_pad * TB + 2 * C_pad * D + 2 * C_pad)
    vmem_bytes += 2 << 20  # headroom for compiler internal scratch
    vmem_bytes = int(min(max(vmem_bytes, 4 << 20), _vmem_cap_bytes()))

    out = pl.pallas_call(
        _linear_sigmoid_kernel,
        out_shape=jax.ShapeDtypeStruct((C_pad, B), jnp.float32),
        grid_spec=pltpu.PrefetchScalarGridSpec(
            num_scalar_prefetch=0,
            grid=(grid_b,),
            in_specs=[
                pl.BlockSpec((TB, D), lambda i: (i, 0)),       # x: batch-tiled
                pl.BlockSpec((C_pad, D), lambda i: (0, 0)),    # weight: VMEM-resident
                pl.BlockSpec((C_pad, 1), lambda i: (0, 0)),    # bias: VMEM-resident
            ],
            out_specs=pl.BlockSpec((C_pad, TB), lambda i: (0, i)),
        ),
        compiler_params=pltpu.CompilerParams(
            dimension_semantics=("parallel",),
            vmem_limit_bytes=vmem_bytes,
        ),
        cost_estimate=pl.CostEstimate(
            flops=2 * B * D * C_pad,
            transcendentals=2 * B * C_pad,        # exp + reciprocal
            bytes_accessed=4 * (B * D + C_pad * D + C_pad * B),
        ),
    )(x, w_pad, b_pad)

    # Tiny (C, B) -> (B, C) slice + transpose in the wrapper (negligible cost).
    return out[:num_classes, :].T


if __name__ == "__main__":
    # Small shapes consistent with the module: batch=8, input_size=32, num_classes=4
    B, input_size, num_classes = 8, 32, 4

    key = jax.random.PRNGKey(0)
    kx, kw, kb = jax.random.split(key, 3)

    x = jax.random.normal(kx, (B, input_size), dtype=jnp.float32)
    # Deterministic init mimicking nn.Linear's uniform(-1/sqrt(fan_in), 1/sqrt(fan_in))
    bound = 1.0 / jnp.sqrt(jnp.float32(input_size))
    weight = jax.random.uniform(kw, (num_classes, input_size),
                                minval=-bound, maxval=bound, dtype=jnp.float32)
    bias = jax.random.uniform(kb, (num_classes,),
                              minval=-bound, maxval=bound, dtype=jnp.float32)

    # Parameter prep is hoisted out of the per-call path (done once at init time).
    w_pad, b_pad = prepare_params(weight, bias)

    out = cancer_classification_forward(x, w_pad, b_pad, num_classes)
    out = jax.block_until_ready(out)

    # Sanity check against pure-JAX reference.
    ref = jax.nn.sigmoid(x @ weight.T + bias)
    assert out.shape == (B, num_classes)
    assert jnp.allclose(out, ref, atol=1e-5, rtol=1e-5)

    print("KERNEL_OK")
</pallas_src>

<mosaic_0001>
module attributes {stable_mosaic.version = 11 : i64} {
  func.func @_linear_sigmoid_kernel(%arg0: i32, %arg1: memref<8x32xf32, #tpu.memory_space<vmem>>, %arg2: memref<8x32xf32, #tpu.memory_space<vmem>>, %arg3: memref<8x1xf32, #tpu.memory_space<vmem>>, %arg4: memref<8x8xf32, #tpu.memory_space<vmem>>) attributes {dimension_semantics = [#tpu.dimension_semantics<parallel>], iteration_bounds = array<i64: 1>, scalar_prefetch = 0 : i64, scratch_operands = 0 : i64, tpu.core_type = #tpu.core_type<tc>, window_params = [{transform_indices = @transform_0, window_bounds = array<i64: 8, 32>}, {pipeline_mode = #tpu.pipeline_mode<synchronous>, transform_indices = @transform_1, window_bounds = array<i64: 8, 32>}, {pipeline_mode = #tpu.pipeline_mode<synchronous>, transform_indices = @transform_2, window_bounds = array<i64: 8, 1>}, {transform_indices = @transform_3, window_bounds = array<i64: 8, 8>}]} {
    %c0 = arith.constant 0 : index
    %c0_0 = arith.constant 0 : index
    %0 = vector.load %arg2[%c0, %c0_0] : memref<8x32xf32, #tpu.memory_space<vmem>>, vector<8x32xf32>
    %c0_1 = arith.constant 0 : index
    %c0_2 = arith.constant 0 : index
    %1 = vector.load %arg1[%c0_1, %c0_2] : memref<8x32xf32, #tpu.memory_space<vmem>>, vector<8x32xf32>
    %cst = arith.constant dense<0.000000e+00> : vector<8x8xf32>
    %2 = tpu.matmul %0, %1, %cst {dimension_numbers = #tpu.dot_dimension_numbers<[1], [1], [0], [0], [0, 0, 1, 0], [], []>} : vector<8x32xf32>, vector<8x32xf32>, vector<8x8xf32> -> vector<8x8xf32>
    %c0_3 = arith.constant 0 : index
    %c0_4 = arith.constant 0 : index
    %3 = vector.load %arg3[%c0_3, %c0_4] : memref<8x1xf32, #tpu.memory_space<vmem>>, vector<8x1xf32>
    %4 = vector.broadcast %3 : vector<8x1xf32> to vector<8x8xf32>
    %5 = arith.addf %2, %4 : vector<8x8xf32>
    %cst_5 = arith.constant 0.000000e+00 : f32
    %6 = vector.broadcast %cst_5 : f32 to vector<8x8xf32>
    %7 = arith.subf %6, %5 : vector<8x8xf32>
    %8 = math.exp %7 : vector<8x8xf32>
    %cst_6 = arith.constant 1.000000e+00 : f32
    %9 = vector.broadcast %cst_6 : f32 to vector<8x8xf32>
    %10 = arith.addf %9, %8 : vector<8x8xf32>
    %11 = tpu.reciprocal %10 : vector<8x8xf32> -> vector<8x8xf32>
    %c0_7 = arith.constant 0 : index
    %c0_8 = arith.constant 0 : index
    %12 = vector.load %arg4[%c0_7, %c0_8] : memref<8x8xf32, #tpu.memory_space<vmem>>, vector<8x8xf32>
    tpu.vector_store %arg4[%c0_7, %c0_8], %11 {strides = array<i32>} : memref<8x8xf32, #tpu.memory_space<vmem>>, vector<8x8xf32>,
    return
  }
  func.func @transform_0(%arg0: i32) -> (i32, i32) {
    %c0_i32 = arith.constant 0 : i32
    %c0_i32_0 = arith.constant 0 : i32
    return %arg0, %c0_i32 : i32, i32
  }
  func.func @transform_1(%arg0: i32) -> (i32, i32) {
    %c0_i32 = arith.constant 0 : i32
    %c0_i32_0 = arith.constant 0 : i32
    %c0_i32_1 = arith.constant 0 : i32
    return %c0_i32, %c0_i32_0 : i32, i32
  }
  func.func @transform_2(%arg0: i32) -> (i32, i32) {
    %c0_i32 = arith.constant 0 : i32
    %c0_i32_0 = arith.constant 0 : i32
    %c0_i32_1 = arith.constant 0 : i32
    return %c0_i32, %c0_i32_0 : i32, i32
  }
  func.func @transform_3(%arg0: i32) -> (i32, i32) {
    %c0_i32 = arith.constant 0 : i32
    %c0_i32_0 = arith.constant 0 : i32
    return %c0_i32, %arg0 : i32, i32
  }
}

</mosaic_0001>

<bundles_post_ra>
// kernel: tpu_custom_call.1
= control target key start
LH: loop header
LB: loop body
LE: loop exit
PB: predicated region body
PF: predicated region fallthrough
CT: control target
= control target key end

     0   :  { %8 = vsyncpa [#allocation3], 0  ;;  %s198_s0 = inlined_call_operand.vmem [shape: f32[8,32], index: 0, kind: input, shape index: {}]   ;;  %s199_s1 = inlined_call_operand.hbm [shape: f32[8,32], index: 1, kind: input, shape index: {}]   ;;  %s200_s2 = inlined_call_operand.vmem [shape: f32[8,1], index: 2, kind: input, shape index: {}]   ;;  %s201_s3 = inlined_call_operand.hbm [shape: f32[8,8], index: 3, kind: output, shape index: {}]  }
   0x1   :  { %9 = vsyncpa [#allocation4], 0  ;;  %s17_s14 = sshll.u32 %s199_s1, 4  ;;  %s163_s15 = smov [#allocation2]   ;;  %s18_s14 = int_to_ptr.hbm [resolvable:$true] %s17_s14 }
   0x2   :  { %s19_s16 = sshll.u32 %s163_s15, 4  ;;  %s20_s16 = int_to_ptr.vmem [resolvable:$true] %s19_s16 }
   0x3   :  { %22 = dma.hbm_to_vmem [thread:$0]  %s18_s14, 128, %s20_s16, [#allocation3]  }
   0x4   :  { %159 = dma.done.wait [#allocation3], 128  }
   0x5   :  { %160 = vsyncadd [#allocation3], 4294967168  ;;  %v164_v0 = vmov 0   ;;  %vm37_vm0 = vcmask 261120   ;;  %v30_v1 = vld [vmem:[%s198_s0] sm:$0xff]  ;;  %s165_s0 = smov [#allocation5]  }
   0x6   :  { %106 = vset.pattern.permute.xlu0 %v164_v0  ;;  %v31_v2 = vld [vmem:[%s200_s2] sm:$0xff]  ;;  %101 = vmatpush.xpose.msk.msra.mxu0 %vm37_vm0, %v30_v1  ;;  %s89_s1 = sshll.u32 %s165_s0, 4  ;;  %s91_s22 = sshll.u32 %s201_s3, 4  ;;  %vm82_vm4 = vcmask 64512   ;;  %s90_s1 = int_to_ptr.vmem [resolvable:$true] %s89_s1  ;;  %s92_s22 = int_to_ptr.hbm [resolvable:$true] %s91_s22 }
   0x7   :  { %v29_v3 = vld [vmem:[#allocation2] sm:$0xff]  ;;  %34 = vperm.xlu0 %106, %v31_v2  }
   0x9   :  { %102 = vmatmul.msk.f32.vlgmr.msra.gmra.mxu0 %vm37_vm0, %v29_v3 }
  0x79   :  { %v35_v4 = vpop.permute.xlu0 %34 }
  0x86   :  { %v61_v5 = vpop.f32.mrf.mxu0 }
  0x87   :  { %v62_v6 = vadd.f32 %v61_v5, %v35_v4 }
  0x89   :  { %v64_v7 = vsub.f32 0.0, %v62_v6 }
  0x8b   :  { %v65_v8 = vmul.f32 1.442695, %v64_v7 }
  0x8d   :  { %107 = vpow2.f32 %v65_v8 }
  0x93   :  { %v108_v9 = vpop.eup %107 }
  0x94   :  { %v67_v10 = vadd.f32 1.0, %v108_v9 }
  0x96   :  { %109 = vrcp.f32 %v67_v10  ;;  %v79_v14 = vand.u32 2147483648, %v67_v10  ;;  %v77_v16 = vand.u32 2147483647, %v67_v10  ;;  %vm73_vm2 = vweird.f32 %v67_v10 }
  0x98   :  { %v80_v18 = vor.u32 1.1754944e-38, %v79_v14  ;;  %vm78_vm5 = vcmp.eq.f32.partialorder %v77_v16, 8.507059e+37 }
  0x9c   :  { %v110_v11 = vpop.eup %109 }
  0x9d   :  { %v69_v12 = vmul.f32 %v110_v11, %v67_v10  ;;  %vm74_vm1 = vweird.f32 %v110_v11 }
  0x9e   :  { %vm75_vm3 = vmor %vm73_vm2, %vm74_vm1 }
  0x9f   :  { %v70_v13 = vsub.f32 1.0, %v69_v12 }
  0xa1   :  { %v71_v15 = vmul.f32 %v110_v11, %v70_v13 }
  0xa3   :  { %v72_v17 = vadd.f32 %v110_v11, %v71_v15 }
  0xa5   :  { %v76_v19 = vsel %vm75_vm3, %v110_v11, %v72_v17 }
  0xa6   :  { %v81_v20 = vsel %vm78_vm5, %v80_v18, %v76_v19 }
  0xa7   :  { %83 = vst.msk [vmem:[#allocation5] sm:$0xff] %vm82_vm4, %v81_v20 }
  0xa8   :  { %94 = dma.vmem_to_hbm [thread:$0]  %s90_s1, 128, %s92_s22, [#allocation4]  }
  0xa9   :  { %161 = dma.done.wait [#allocation4], 128  }
  0xaa   :  { %162 = vsyncadd [#allocation4], 4294967168 }
  0xab   :  { %99 = vsyncpa [#allocation3], 1 }
  0xac   :  { %100 = vsyncpa [#allocation4], 1 }

</bundles_post_ra>
